<compile_context>
chip_gen: v5e
topology: v5e:2x2
jax: 0.10.0
libtpu: 0.0.40
codegen_flags: <defaults>
</compile_context>

<pallas_src>
import functools

import jax
import jax.numpy as jnp
from jax.experimental import pallas as pl
from jax.experimental.pallas import tpu as pltpu

architecture_config = [
    (7, 64, 2, 3), 'M',
    (3, 192, 1, 1), 'M',
    (1, 128, 1, 0), (3, 256, 1, 1), (1, 256, 1, 0), (3, 512, 1, 1), 'M',
    [(1, 256, 1, 0), (3, 512, 1, 1), 4], (1, 512, 1, 0), (3, 1024, 1, 1), 'M',
    [(1, 512, 1, 0), (3, 1024, 1, 1), 2],
    (3, 1024, 1, 1), (3, 1024, 2, 1), (3, 1024, 1, 1), (3, 1024, 1, 1),
]


def _round_up(x, m):
    return (x + m - 1) // m * m


def _largest_tile(total, cap):
    """Largest multiple of 128 <= cap that divides `total` (total % 128 == 0)."""
    t = max(128, min(cap, total) // 128 * 128)
    while total % t:
        t -= 128
    return t


def _choose_tiles(M, Kp, Np):
    """Tile sizes for an (M, Kp) x (Kp, Np) GEMM; Kp, Np are multiples of 128."""
    skinny = _round_up(M, 8) <= 32
    if skinny:
        # GEMV-like (FC head, 1x1-spatial convs): stream large weight slabs.
        tm = min(32, _round_up(M, 16))
        tk = _largest_tile(Kp, 2048)
        tn = _largest_tile(Np, 512)
        # v7x has 2 TensorCores: make sure a parallel axis has >=2 blocks.
        if Np // tn < 2 and Np >= 256:
            tn = _largest_tile(Np, Np // 2)
    else:
        tm = min(256, _round_up(M, 8))
        tk = _largest_tile(Kp, 1024)
        tn = _largest_tile(Np, 256)
    return tm, tk, tn, _round_up(M, tm)


# ----------------------------------------------------------------------------
# Fused Pallas kernel:  out = act((X @ W) * scale + shift)
#   X: (M, K) bf16, W: (K, N) bf16, scale/shift: (1, N) f32 broadcast over rows.
#   Accumulation + epilogue math in f32; only the final store downcasts.
#   - conv layers: scale/shift = folded eval-mode BatchNorm, act = LeakyReLU(0.1)
#   - fc layers:   scale = 1, shift = bias, act optional
# ----------------------------------------------------------------------------
def _fused_matmul_kernel(x_ref, w_ref, scale_ref, shift_ref, o_ref, acc_ref,
                         *, apply_act, negative_slope):
    k = pl.program_id(2)

    @pl.when(k == 0)
    def _init():
        acc_ref[...] = jnp.zeros_like(acc_ref)

    acc_ref[...] += jnp.dot(x_ref[...], w_ref[...],
                            preferred_element_type=jnp.float32)

    @pl.when(k == pl.num_programs(2) - 1)
    def _finalize():
        y = acc_ref[...] * scale_ref[...] + shift_ref[...]
        if apply_act:
            y = jnp.where(y > 0, y, negative_slope * y)
        o_ref[...] = y.astype(o_ref.dtype)


def fused_matmul(x, w, scale, shift, n_out, *, apply_act=True,
                 negative_slope=0.1, out_dtype=jnp.bfloat16):
    """act((x @ w) * scale + shift) with a tiled Pallas TPU kernel.

    `w` is a pre-padded (Kp, Np) bf16 weight; `scale`/`shift` are pre-padded
    (1, Np) f32.  `x` must already have K == Kp columns.  Only the first
    `n_out` output columns (and M rows) are returned.
    """
    M, K = x.shape
    Kp, Np = w.shape
    assert K == Kp, (K, Kp)

    tm, tk, tn, Mp = _choose_tiles(M, Kp, Np)

    xp = x.astype(jnp.bfloat16)
    if Mp != M:
        xp = jnp.pad(xp, ((0, Mp - M), (0, 0)))

    grid = (Mp // tm, Np // tn, Kp // tk)
    kernel = functools.partial(_fused_matmul_kernel,
                               apply_act=apply_act,
                               negative_slope=negative_slope)

    out = pl.pallas_call(
        kernel,
        out_shape=jax.ShapeDtypeStruct((Mp, Np), out_dtype),
        grid_spec=pltpu.PrefetchScalarGridSpec(
            num_scalar_prefetch=0,
            grid=grid,
            in_specs=[
                pl.BlockSpec((tm, tk), lambda i, j, k: (i, k)),
                pl.BlockSpec((tk, tn), lambda i, j, k: (k, j)),
                pl.BlockSpec((1, tn), lambda i, j, k: (0, j)),
                pl.BlockSpec((1, tn), lambda i, j, k: (0, j)),
            ],
            out_specs=pl.BlockSpec((tm, tn), lambda i, j, k: (i, j)),
            scratch_shapes=[pltpu.VMEM((tm, tn), jnp.float32)],
        ),
        compiler_params=pltpu.CompilerParams(
            dimension_semantics=("parallel", "parallel", "arbitrary")),
    )(xp, w, scale, shift)

    return out[:M, :n_out]


# ----------------------------------------------------------------------------
# Glue: im2col, maxpool, layer spec construction, deterministic param init
# ----------------------------------------------------------------------------
def im2col_nhwc(x, kh, kw, stride, pad, k_pad_to=None):
    """x: (N,H,W,C) -> patches (N*OH*OW, Kp), column order (kh, kw, cin).

    If k_pad_to > kh*kw*C, zero columns are appended inside the single
    concatenate (no separate full-matrix pad copy).
    """
    if pad:
        x = jnp.pad(x, ((0, 0), (pad, pad), (pad, pad), (0, 0)))
    n, h, w, c = x.shape
    oh = (h - kh) // stride + 1
    ow = (w - kw) // stride + 1
    cols = []
    for i in range(kh):
        for j in range(kw):
            cols.append(x[:, i:i + (oh - 1) * stride + 1:stride,
                             j:j + (ow - 1) * stride + 1:stride, :])
    k_total = kh * kw * c
    if k_pad_to is not None and k_pad_to > k_total:
        cols.append(jnp.zeros((n, oh, ow, k_pad_to - k_total), x.dtype))
    patches = jnp.concatenate(cols, axis=-1) if len(cols) > 1 else cols[0]
    kdim = patches.shape[-1]
    # TODO(synk): fold the kh*kw taps into an extra "arbitrary" reduction grid
    # axis (shifted-window index_map) to avoid materializing the 9x im2col
    # patch matrix in HBM for the 3x3/7x7 layers.
    return patches.reshape(n * oh * ow, kdim), oh, ow


def maxpool2x2(x):
    n, h, w, c = x.shape
    return x.reshape(n, h // 2, 2, w // 2, 2, c).max(axis=(2, 4))


def build_conv_layer_specs(arch, in_channels=3):
    specs = []
    c = in_channels
    for x in arch:
        if isinstance(x, tuple):
            k, cout, s, p = x
            specs.append(('conv', c, cout, k, s, p))
            c = cout
        elif isinstance(x, str):
            specs.append(('pool',))
        elif isinstance(x, list):
            c1, c2, rpts = x
            for _ in range(rpts):
                specs.append(('conv', c, c1[1], c1[0], c1[2], c1[3]))
                specs.append(('conv', c1[1], c2[1], c2[0], c2[2], c2[3]))
                c = c2[1]
    return specs, c


def init_params(key, specs, split_size):
    """Deterministic synthetic params (Conv2d no-bias, eval-mode BatchNorm2d, Linear).

    Weights are flattened, zero-padded to (Kp, Np) multiples of 128 and cast
    to bf16 ONCE here; BN scale/shift are folded and padded to (1, Np) f32.
    """
    conv_params = []
    eps = 1e-5
    for spec in specs:
        if spec[0] == 'conv':
            _, cin, cout, k, s, p = spec
            key, wk, gk, bk = jax.random.split(key, 4)
            fan_in = cin * k * k
            w = jax.random.normal(wk, (k, k, cin, cout), jnp.float32)
            w = w * jnp.sqrt(2.0 / fan_in)
            gamma = 1.0 + 0.01 * jax.random.normal(gk, (cout,), jnp.float32)
            beta = 0.01 * jax.random.normal(bk, (cout,), jnp.float32)
            run_mean = jnp.zeros((cout,), jnp.float32)
            run_var = jnp.ones((cout,), jnp.float32)
            # Eval-mode BN folded into per-channel scale/shift.
            scale = gamma / jnp.sqrt(run_var + eps)
            shift = beta - run_mean * scale

            K = k * k * cin
            Kp = _round_up(K, 128)
            Np = _round_up(cout, 128)
            wp = jnp.pad(w.reshape(K, cout),
                         ((0, Kp - K), (0, Np - cout))).astype(jnp.bfloat16)
            sp = jnp.pad(scale, (0, Np - cout)).reshape(1, Np)
            bp = jnp.pad(shift, (0, Np - cout)).reshape(1, Np)
            conv_params.append(dict(type='conv', w=wp, scale=sp, shift=bp,
                                    k=k, s=s, p=p, cout=cout))
        else:
            conv_params.append(dict(type='pool'))

    in_f = 1024 * split_size * split_size
    out_f = 7 * 7 * 30
    key, k1, k2, k3, k4 = jax.random.split(key, 5)
    w1 = jax.random.normal(k1, (in_f, 4096), jnp.float32) / jnp.sqrt(in_f)
    b1 = 0.01 * jax.random.normal(k2, (4096,), jnp.float32)
    w2 = jax.random.normal(k3, (4096, out_f), jnp.float32) / jnp.sqrt(4096.0)
    b2 = 0.01 * jax.random.normal(k4, (out_f,), jnp.float32)

    Kp1, Np1 = _round_up(in_f, 128), _round_up(4096, 128)
    Kp2, Np2 = _round_up(4096, 128), _round_up(out_f, 128)
    fc_params = dict(
        w1=jnp.pad(w1, ((0, Kp1 - in_f), (0, Np1 - 4096))).astype(jnp.bfloat16),
        s1=jnp.ones((1, Np1), jnp.float32),
        b1=jnp.pad(b1, (0, Np1 - 4096)).reshape(1, Np1),
        w2=jnp.pad(w2, ((0, Kp2 - 4096), (0, Np2 - out_f))).astype(jnp.bfloat16),
        s2=jnp.ones((1, Np2), jnp.float32),
        b2=jnp.pad(b2, (0, Np2 - out_f)).reshape(1, Np2),
        out_f=out_f,
    )
    return conv_params, fc_params


# ----------------------------------------------------------------------------
# Forward pass
# ----------------------------------------------------------------------------
def cnn_block(x, p):
    """Conv2d(no bias) -> BatchNorm2d(eval) -> LeakyReLU(0.1), NHWC, bf16 out."""
    n = x.shape[0]
    patches, oh, ow = im2col_nhwc(x, p['k'], p['k'], p['s'], p['p'],
                                  k_pad_to=p['w'].shape[0])
    y = fused_matmul(patches, p['w'], p['scale'], p['shift'], p['cout'],
                     apply_act=True, negative_slope=0.1,
                     out_dtype=jnp.bfloat16)
    return y.reshape(n, oh, ow, p['cout'])


def yolov1_forward(x_nchw, conv_params, fc_params):
    # layout: NCHW in -> NHWC internally; activations carried in bf16.
    x = jnp.transpose(x_nchw, (0, 2, 3, 1)).astype(jnp.bfloat16)
    for p in conv_params:
        if p['type'] == 'conv':
            x = cnn_block(x, p)
        else:
            x = maxpool2x2(x)
    # torch.flatten(x, start_dim=1) on NCHW -> (N, C*H*W), channel-major.
    n, h, w, c = x.shape
    x = jnp.transpose(x, (0, 3, 1, 2)).reshape(n, c * h * w)
    if x.shape[1] < fc_params['w1'].shape[0]:
        x = jnp.pad(x, ((0, 0), (0, fc_params['w1'].shape[0] - x.shape[1])))
    # fcs: Linear -> Dropout(0.0) (identity) -> LeakyReLU(0.1) -> Linear
    # TODO(synk): nn.Dropout(p=0.0) is an exact identity; no kernel emitted.
    x = fused_matmul(x, fc_params['w1'], fc_params['s1'], fc_params['b1'],
                     4096, apply_act=True, negative_slope=0.1,
                     out_dtype=jnp.bfloat16)
    x = fused_matmul(x, fc_params['w2'], fc_params['s2'], fc_params['b2'],
                     fc_params['out_f'], apply_act=False,
                     out_dtype=jnp.float32)
    return x


if __name__ == "__main__":
    key = jax.random.PRNGKey(0)
    kx, kp = jax.random.split(key)

    # Small but architecture-consistent shapes: 64x64 input -> darknet output
    # spatial 1x1 (overall /64 downsampling), so split_size=1 for the FC head.
    batch, in_channels, spatial = 2, 3, 64
    split_size, num_boxes, num_classes = 1, 2, 20  # head dim hardcoded to 7*7*30 by the module

    x = jax.random.normal(kx, (batch, in_channels, spatial, spatial), jnp.float32)

    specs, _ = build_conv_layer_specs(architecture_config, in_channels=in_channels)
    conv_params, fc_params = init_params(kp, specs, split_size=split_size)

    out = yolov1_forward(x, conv_params, fc_params)
    out = jax.block_until_ready(out)

    assert out.shape == (batch, 7 * 7 * 30), out.shape
    assert jnp.all(jnp.isfinite(out))
    print("KERNEL_OK")
</pallas_src>

<mosaic_0001>
module attributes {stable_mosaic.version = 11 : i64} {
  func.func @_fused_matmul_kernel(%arg0: i32, %arg1: i32, %arg2: i32, %arg3: memref<256x256xbf16, #tpu.memory_space<vmem>>, %arg4: memref<256x128xbf16, #tpu.memory_space<vmem>>, %arg5: memref<1x128xf32, #tpu.memory_space<vmem>>, %arg6: memref<1x128xf32, #tpu.memory_space<vmem>>, %arg7: memref<256x128xbf16, #tpu.memory_space<vmem>>, %arg8: memref<256x128xf32, #tpu.memory_space<vmem>>) attributes {dimension_semantics = [#tpu.dimension_semantics<parallel>, #tpu.dimension_semantics<parallel>, #tpu.dimension_semantics<arbitrary>], iteration_bounds = array<i64: 8, 1, 1>, scalar_prefetch = 0 : i64, scratch_operands = 1 : i64, tpu.core_type = #tpu.core_type<tc>, window_params = [{transform_indices = @transform_0, window_bounds = array<i64: 256, 256>}, {transform_indices = @transform_1, window_bounds = array<i64: 256, 128>}, {transform_indices = @transform_2, window_bounds = array<i64: 1, 128>}, {transform_indices = @transform_3, window_bounds = array<i64: 1, 128>}, {transform_indices = @transform_4, window_bounds = array<i64: 256, 128>}]} {
    %c0_i32 = arith.constant 0 : i32
    %0 = arith.cmpi eq, %arg2, %c0_i32 : i32
    %1 = arith.extui %0 : i1 to i32
    %c0_i32_0 = arith.constant 0 : i32
    %2 = arith.cmpi ne, %1, %c0_i32_0 : i32
    scf.if %2 {
      %cst_10 = arith.constant 0.000000e+00 : f32
      %12 = vector.broadcast %cst_10 : f32 to vector<256x128xf32>
      %c0_11 = arith.constant 0 : index
      %c0_12 = arith.constant 0 : index
      %13 = vector.load %arg8[%c0_11, %c0_12] : memref<256x128xf32, #tpu.memory_space<vmem>>, vector<256x128xf32>
      tpu.vector_store %arg8[%c0_11, %c0_12], %12 {strides = array<i32>} : memref<256x128xf32, #tpu.memory_space<vmem>>, vector<256x128xf32>,
    } else {
    }
    %c0 = arith.constant 0 : index
    %c0_1 = arith.constant 0 : index
    %3 = vector.load %arg8[%c0, %c0_1] : memref<256x128xf32, #tpu.memory_space<vmem>>, vector<256x128xf32>
    %c0_2 = arith.constant 0 : index
    %c0_3 = arith.constant 0 : index
    %4 = vector.load %arg3[%c0_2, %c0_3] : memref<256x256xbf16, #tpu.memory_space<vmem>>, vector<256x256xbf16>
    %c0_4 = arith.constant 0 : index
    %c0_5 = arith.constant 0 : index
    %5 = vector.load %arg4[%c0_4, %c0_5] : memref<256x128xbf16, #tpu.memory_space<vmem>>, vector<256x128xbf16>
    %cst = arith.constant dense<0.000000e+00> : vector<256x128xf32>
    %6 = tpu.matmul %4, %5, %cst {dimension_numbers = #tpu.dot_dimension_numbers<[1], [0], [0], [1], [0, 0, 1, 1], [], []>} : vector<256x256xbf16>, vector<256x128xbf16>, vector<256x128xf32> -> vector<256x128xf32>
    %7 = arith.addf %3, %6 : vector<256x128xf32>
    %c0_6 = arith.constant 0 : index
    %c0_7 = arith.constant 0 : index
    %8 = vector.load %arg8[%c0_6, %c0_7] : memref<256x128xf32, #tpu.memory_space<vmem>>, vector<256x128xf32>
    tpu.vector_store %arg8[%c0_6, %c0_7], %7 {strides = array<i32>} : memref<256x128xf32, #tpu.memory_space<vmem>>, vector<256x128xf32>,
    %c0_i32_8 = arith.constant 0 : i32
    %9 = arith.cmpi eq, %arg2, %c0_i32_8 : i32
    %10 = arith.extui %9 : i1 to i32
    %c0_i32_9 = arith.constant 0 : i32
    %11 = arith.cmpi ne, %10, %c0_i32_9 : i32
    scf.if %11 {
      %c0_10 = arith.constant 0 : index
      %c0_11 = arith.constant 0 : index
      %12 = vector.load %arg8[%c0_10, %c0_11] : memref<256x128xf32, #tpu.memory_space<vmem>>, vector<256x128xf32>
      %c0_12 = arith.constant 0 : index
      %c0_13 = arith.constant 0 : index
      %13 = vector.load %arg5[%c0_12, %c0_13] : memref<1x128xf32, #tpu.memory_space<vmem>>, vector<1x128xf32>
      %14 = vector.broadcast %13 : vector<1x128xf32> to vector<256x128xf32>
      %15 = arith.mulf %12, %14 : vector<256x128xf32>
      %c0_14 = arith.constant 0 : index
      %c0_15 = arith.constant 0 : index
      %16 = vector.load %arg6[%c0_14, %c0_15] : memref<1x128xf32, #tpu.memory_space<vmem>>, vector<1x128xf32>
      %17 = vector.broadcast %16 : vector<1x128xf32> to vector<256x128xf32>
      %18 = arith.addf %15, %17 : vector<256x128xf32>
      %cst_16 = arith.constant 0.000000e+00 : f32
      %19 = vector.broadcast %cst_16 : f32 to vector<256x128xf32>
      %20 = arith.cmpf ogt, %18, %19 : vector<256x128xf32>
      %cst_17 = arith.constant 1.000000e-01 : f32
      %21 = vector.broadcast %cst_17 : f32 to vector<256x128xf32>
      %22 = arith.mulf %21, %18 : vector<256x128xf32>
      %23 = arith.select %20, %18, %22 : vector<256x128xi1>, vector<256x128xf32>
      %24 = arith.truncf %23 : vector<256x128xf32> to vector<256x128xbf16>
      %c0_18 = arith.constant 0 : index
      %c0_19 = arith.constant 0 : index
      %25 = vector.load %arg7[%c0_18, %c0_19] : memref<256x128xbf16, #tpu.memory_space<vmem>>, vector<256x128xbf16>
      tpu.vector_store %arg7[%c0_18, %c0_19], %24 {strides = array<i32>} : memref<256x128xbf16, #tpu.memory_space<vmem>>, vector<256x128xbf16>,
    } else {
    }
    return
  }
  func.func @transform_0(%arg0: i32, %arg1: i32, %arg2: i32) -> (i32, i32) {
    %c0_i32 = arith.constant 0 : i32
    return %arg0, %arg2 : i32, i32
  }
  func.func @transform_1(%arg0: i32, %arg1: i32, %arg2: i32) -> (i32, i32) {
    %c0_i32 = arith.constant 0 : i32
    return %arg2, %arg1 : i32, i32
  }
  func.func @transform_2(%arg0: i32, %arg1: i32, %arg2: i32) -> (i32, i32) {
    %c0_i32 = arith.constant 0 : i32
    %c0_i32_0 = arith.constant 0 : i32
    return %c0_i32, %arg1 : i32, i32
  }
  func.func @transform_3(%arg0: i32, %arg1: i32, %arg2: i32) -> (i32, i32) {
    %c0_i32 = arith.constant 0 : i32
    %c0_i32_0 = arith.constant 0 : i32
    return %c0_i32, %arg1 : i32, i32
  }
  func.func @transform_4(%arg0: i32, %arg1: i32, %arg2: i32) -> (i32, i32) {
    %c0_i32 = arith.constant 0 : i32
    return %arg0, %arg1 : i32, i32
  }
}

</mosaic_0001>

<bundles_post_ra>
// kernel: tpu_custom_call.1
= control target key start
LH: loop header
LB: loop body
LE: loop exit
PB: predicated region body
PF: predicated region fallthrough
CT: control target
= control target key end

     0   :  { %s2287_s0 = inlined_call_operand.hbm [shape: bf16[2048,256], index: 0, kind: input, shape index: {}]   ;;  %s2288_s1 = inlined_call_operand.hbm [shape: bf16[256,128], index: 1, kind: input, shape index: {}]   ;;  %s2289_s2 = inlined_call_operand.vmem [shape: f32[1,128], index: 2, kind: input, shape index: {}]   ;;  %s2290_s3 = inlined_call_operand.vmem [shape: f32[1,128], index: 3, kind: input, shape index: {}]   ;;  %s2291_s4 = inlined_call_operand.hbm [shape: bf16[2048,128], index: 4, kind: output, shape index: {}]  }
   0x1   :  { %2293 = sst [smem:[#allocation13_spill]] %s2288_s1 }
   0x2   :  { %9 = vsyncpa [#allocation4], 0 }
   0x3   :  { %11 = vsyncpa [#allocation4 + $0x1], 0 }
   0x4   :  { %12 = vsyncpa [#allocation7], 0 }
   0x5   :  { %13 = vsyncpa [#allocation5], 0 }
   0x6   :  { %15 = vsyncpa [#allocation5 + $0x1], 0  ;;  %s1980_s15 = smov 0   ;;  %s1982_s16 = smov 0  }
   0x7   :  { %s1984_s17 = smov 0   ;;  %s1986_s18 = smov 0  }
   0x8   :  { %s1988_s19 = smov 0   ;;  %s1990_s20 = smov 0  }
   0x9 LB: > { %s1345_s21 = sadd.s32 4294967295, %s1946_s20   ;;  %s1346_s22 = sadd.s32 4294967294, %s1946_s20   ;;  %s1946_s20 = sphi %s1990_s20, %s21_s20   ;;  %s1942_s19 = sphi %s1988_s19, %s2308_s19   ;;  %s1938_s18 = sphi %s1986_s18, %s2307_s18   ;;  %s1934_s17 = sphi %s1984_s17, %s2306_s17   ;;  %s1930_s16 = sphi %s1982_s16, %s2305_s16   ;;  %s1926_s15 = sphi %s1980_s15, %s2304_s15  }
   0xa   : > { %p62_p0 = scmp.ne.s32.totalorder %s1930_s16, %s1926_s15  ;;  %p2014_p1 = scmp.eq.s32.totalorder %s1345_s21, 0 }
   0xb   : > { %p2018_p2 = scmp.eq.s32.totalorder %s1345_s21, 7  ;;  %p174_p3 = scmp.eq.s32.totalorder %s1346_s22, 7 }
   0xc   : > { %p2024_p4 = por %p2014_p1, %p62_p0  ;;  %p1347_p5 = scmp.ge.s32.totalorder %s1946_s20, 1 }
   0xd   : > { %p2029_p6 = por %p174_p3, %p62_p0  ;;  %p181_p7 = scmp.lt.s32.totalorder %s1946_s20, 9 }
   0xe   : > { %s2298_s1 = sld [smem:[#allocation13_spill]]  ;;  %s1948_s5 = smov [#allocation6]  }
   0xf   : > { %p2037_p8 = pnand %p1347_p5, %p181_p7  ;;  %s198_s6 = sshll.u32 %s1948_s5, 4  ;;  %s199_s6 = int_to_ptr.vmem [resolvable:$true] %s198_s6 }
  0x10   : > { %s1949_s7 = smov 64   ;;  %s1950_s8 = smov 4  }
  0x11   : > { %p1727_p9 = pneg %p2037_p8  ;;  %s40_s9 = sadd.s32 1, %s1942_s19 }
  0x12   : > { %p42_p11 = scmp.ge.s32.totalorder %s40_s9, 8  ;;  %s49_s10 = sadd.s32 1, %s1934_s17 }
  0x13   : > { %p1728_p10 = pnand %p1727_p9, %p2014_p1  ;;  %p56_p12 = scmp.ne.s32.totalorder %s1934_s17, %s1930_s16 }
  0x14   : > { %s196_s29 = sshll.u32 %s2298_s1, 4  ;;  %p57_p13 = scmp.eq.s32.totalorder %s1946_s20, 0  ;;  %s197_s29 = int_to_ptr.hbm [resolvable:$true] %s196_s29 }
  0x15   : > { %1730 = dma.hbm_to_vmem [thread:$0]  (!%p1728_p10), %s197_s29, 2048, %s199_s6, [#allocation7], %s1949_s7, %s1949_s7, %s1950_s8  }
  0x16   : > { %s2310_s9 = smov (%p42_p11, %s40_s9), 0  ;;  %p2052_p0 = por %p57_p13, %p56_p12 }
  0x17   : > { %2300 = sst [smem:[#allocation12_spill]] %s2310_s9  ;;  %p2058_p3 = por %p2018_p2, %p56_p12 }
  0x18   : > { %s44_s13 = ssub.s32 %s1942_s19, %s2310_s9  ;;  %p1740_p5 = scmp.lt.s32.totalorder %s1946_s20, 8 }
  0x19   : > { %p47_p7 = scmp.eq.s32.totalorder %s44_s13, 0  ;;  %s224_s14 = sand.u32 1, %s1934_s17  }
  0x1a   : > { %s1352_s21 = sshll.u32 %s224_s14, 8  ;;  %s1558_s27 = sshll.u32 %s1942_s19, 8 }
  0x1b   : > { %s2067_s22 = scalar_select %p47_p7, %s1934_s17, %s49_s10  }
  0x1c   : > { %s236_s5 = scalar_lea.hbm %s2287_s0, %s1558_s27  ;;  %s228_s6 = scalar_lea.vmem [#allocation3], %s1352_s21 }
  0x1d   : > { %s239_s7 = sshll.u32 %s228_s6, 4  ;;  %s237_s24 = sshll.u32 %s236_s5, 4  ;;  %s240_s7 = int_to_ptr.vmem [resolvable:$true] %s239_s7  ;;  %s238_s24 = int_to_ptr.hbm [resolvable:$true] %s237_s24 }
  0x1e   : > { %p1732_p2 = pnand %p1740_p5, %p2052_p0  ;;  %s225_s8 = scalar_lea.sflag [#allocation4], %s224_s14 }
  0x1f   : > { %s1951_s1 = smov 128   ;;  %s1952_s9 = smov 8  }
  0x20   : > { %1734 = dma.hbm_to_vmem [thread:$0]  (!%p1732_p2), %s238_s24, 4096, %s240_s7, %s225_s8, %s1951_s1, %s1951_s1, %s1952_s9  }
  0x21   : > { %251 = sbr.rel (%p2037_p8) target bundleno = 341 (0x155), region = 36  ;;  %s2078_s10 = sand.u32 (!%p2037_p8), 1, %s1930_s16  }
  0x22   : > { %s1357_s13 = sshll.u32 (!%p2037_p8), %s2078_s10, 8  ;;  %s254_s21 = scalar_lea.sflag (!%p2037_p8), [#allocation4], %s2078_s10 }
  0x23   : > { %s2082_s27 = scalar_lea.vmem (!%p2037_p8), [#allocation3], %s1357_s13 }
  0x26   : > { %1913 = dma.done.wait (%p2024_p4), %s254_s21, 4096  }
  0x27   : > { %1915 = vsyncadd (%p2024_p4), %s254_s21, 4294963200 }
  0x28   : > { %1917 = dma.done.wait (%p2014_p1), [#allocation7], 2048  }
  0x29   : > { %1919 = vsyncadd (%p2014_p1), [#allocation7], 4294965248  ;;  %v1598_v0 = vld [vmem:[#allocation6 + $0x38] sm:$0xff]  ;;  %v1597_v2 = vld [vmem:[#allocation6 + $0x30] sm:$0xff]  ;;  %s1359_s9 = sshll.u32 %s2078_s10, 7  ;;  %s1607_s14 = sshll.u32 %s1938_s18, 7 }
  0x2a   : > { %v1606_v1 = vld [vmem:[#allocation6 + $0x78] sm:$0xff]  ;;  %692 = vmatpush.bf16.msra.mxu0 %v1598_v0  ;;  %1703 = vmatpush.bf16.msra.mxu2 %v1598_v0  ;;  %v1605_v3 = vld [vmem:[#allocation6 + $0x70] sm:$0xff]  ;;  %v1596_v4 = vld [vmem:[#allocation6 + $0x28] sm:$0xff]  ;;  %s2175_s11 = scalar_lea.vmem [#allocation8], %s1359_s9  ;;  %s1214_s5 = scalar_lea.hbm %s2291_s4, %s1607_s14 }
  0x2b   : > { %781 = vmatpush.bf16.msra.mxu1 %v1606_v1  ;;  %1711 = vmatpush.bf16.msra.mxu3 %v1606_v1  ;;  %v1604_v5 = vld [vmem:[#allocation6 + $0x68] sm:$0xff]  ;;  %v1595_v6 = vld [vmem:[#allocation6 + $0x20] sm:$0xff]  ;;  %v1594_v8 = vld [vmem:[#allocation6 + $0x18] sm:$0xff]  ;;  %s1215_s18 = sshll.u32 %s2175_s11, 4  ;;  %s1217_s6 = sshll.u32 %s1214_s5, 4  ;;  %s1216_s18 = int_to_ptr.vmem [resolvable:$true] %s1215_s18  ;;  %s1218_s6 = int_to_ptr.hbm [resolvable:$true] %s1217_s6 }
  0x2c   : > { %v1603_v7 = vld [vmem:[#allocation6 + $0x60] sm:$0xff]  ;;  %v1602_v9 = vld [vmem:[#allocation6 + $0x58] sm:$0xff]  ;;  %v1593_v10 = vld [vmem:[#allocation6 + $0x10] sm:$0xff]  ;;  %s1202_s7 = scalar_lea.sflag [#allocation5], %s2078_s10  ;;  %s1874_s24 = sshra.s32 %s1218_s6, 4  ;;  %s1875_s24 = int_to_ptr.hbm [resolvable:$true] %s1874_s24 }
  0x2d   : > { %v1601_v11 = vld [vmem:[#allocation6 + $0x50] sm:$0xff]  ;;  %v1592_v12 = vld [vmem:[#allocation6 + $0x8] sm:$0xff]  ;;  %v1591_v14 = vld [vmem:[#allocation6] sm:$0xff]  ;;  %s1876_s8 = scalar_lea.hbm %s1875_s24, 128  ;;  %p1881_p9 = scmp.lt.s32.totalorder %s1875_s24, %s2291_s4 }
  0x2e   : > { %693 = vmatpush.bf16.msra.mxu0 %v1597_v2  ;;  %1704 = vmatpush.bf16.msra.mxu2 %v1597_v2  ;;  %v1600_v13 = vld [vmem:[#allocation6 + $0x48] sm:$0xff]  ;;  %v1599_v15 = vld [vmem:[#allocation6 + $0x40] sm:$0xff]  ;;  %v1370_v28 = vld [vmem:[%s2082_s27 + $0x10] sm:$0xf]  ;;  %p1877_p1 = scmp.ne.s32.totalorder %s1875_s24, %s1876_s8 }
  0x2f   : > { %782 = vmatpush.bf16.msra.mxu1 %v1605_v3  ;;  %1712 = vmatpush.bf16.msra.mxu3 %v1605_v3  ;;  %v1362_v16 = vld [vmem:[%s2082_s27] sm:$0xf]  ;;  %v1560_v17 = vld [vmem:[%s2082_s27 + $0x4] sm:$0xf0]  ;;  %v1559_v20 = vld [vmem:[%s2082_s27 + $0x4] sm:$0xf] }
  0x30   : > { %v1426_v18 = vld [vmem:[%s2082_s27 + $0x80] sm:$0xf]  ;;  %v1576_v19 = vld [vmem:[%s2082_s27 + $0x84] sm:$0xf0]  ;;  %v1364_v21 = vld [vmem:[%s2082_s27 + $0x8] sm:$0xf0]  ;;  %v1363_v24 = vor.u32 %v1560_v17, %v1362_v16  ;;  %p1878_p4 = pnand %p1877_p1, %p2058_p3 }
  0x31   : > { %v1575_v22 = vld [vmem:[%s2082_s27 + $0x84] sm:$0xf]  ;;  %v1428_v23 = vld [vmem:[%s2082_s27 + $0x88] sm:$0xf0]  ;;  %v1427_v25 = vor.u32 %v1576_v19, %v1426_v18  ;;  %v1367_v26 = vor.u32 %v1559_v20, %v1364_v21  ;;  %v1562_v29 = vld [vmem:[%s2082_s27 + $0x14] sm:$0xf0] }
  0x32   : > { %694 = vmatpush.bf16.msra.mxu0 %v1596_v4  ;;  %1705 = vmatpush.bf16.msra.mxu2 %v1596_v4  ;;  %v1431_v27 = vor.u32 %v1575_v22, %v1428_v23  ;;  %v1434_v30 = vld [vmem:[%s2082_s27 + $0x90] sm:$0xf]  ;;  %v1578_v31 = vld [vmem:[%s2082_s27 + $0x94] sm:$0xf0]  ;;  %v1561_v32 = vld [vmem:[%s2082_s27 + $0x14] sm:$0xf]  ;;  %v1371_v36 = vor.u32 %v1562_v29, %v1370_v28  ;;  %p1879_p8 = pneg %p1878_p4 }
  0x33   : > { %783 = vmatpush.bf16.msra.mxu1 %v1604_v5  ;;  %1713 = vmatpush.bf16.msra.mxu3 %v1604_v5  ;;  %v1372_v33 = vld [vmem:[%s2082_s27 + $0x18] sm:$0xf0]  ;;  %v1577_v34 = vld [vmem:[%s2082_s27 + $0x94] sm:$0xf]  ;;  %v1435_v37 = vor.u32 %v1578_v31, %v1434_v30  ;;  %v1378_v40 = vld [vmem:[%s2082_s27 + $0x20] sm:$0xf] }
  0x34   : > { %v1436_v35 = vld [vmem:[%s2082_s27 + $0x98] sm:$0xf0]  ;;  %v1375_v38 = vor.u32 %v1561_v32, %v1372_v33  ;;  %v1564_v41 = vld [vmem:[%s2082_s27 + $0x24] sm:$0xf0]  ;;  %v1442_v42 = vld [vmem:[%s2082_s27 + $0xa0] sm:$0xf] }
  0x35   : > { %v1439_v39 = vor.u32 %v1577_v34, %v1436_v35  ;;  %v1580_v43 = vld [vmem:[%s2082_s27 + $0xa4] sm:$0xf0]  ;;  %v1563_v44 = vld [vmem:[%s2082_s27 + $0x24] sm:$0xf]  ;;  %v1380_v45 = vld [vmem:[%s2082_s27 + $0x28] sm:$0xf0]  ;;  %v1379_v48 = vor.u32 %v1564_v41, %v1378_v40 }
  0x36   : > { %695 = vmatpush.bf16.msra.mxu0 %v1595_v6  ;;  %1706 = vmatpush.bf16.msra.mxu2 %v1595_v6  ;;  %v1579_v46 = vld [vmem:[%s2082_s27 + $0xa4] sm:$0xf]  ;;  %v1444_v47 = vld [vmem:[%s2082_s27 + $0xa8] sm:$0xf0]  ;;  %v1443_v49 = vor.u32 %v1580_v43, %v1442_v42  ;;  %v1383_v50 = vor.u32 %v1563_v44, %v1380_v45  ;;  %v1386_v52 = vld [vmem:[%s2082_s27 + $0x30] sm:$0xf] }
  0x37   : > { %784 = vmatpush.bf16.msra.mxu1 %v1603_v7  ;;  %1714 = vmatpush.bf16.msra.mxu3 %v1603_v7  ;;  %v1447_v51 = vor.u32 %v1579_v46, %v1444_v47  ;;  %v1566_v53 = vld [vmem:[%s2082_s27 + $0x34] sm:$0xf0]  ;;  %v1450_v54 = vld [vmem:[%s2082_s27 + $0xb0] sm:$0xf]  ;;  %v1565_v56 = vld [vmem:[%s2082_s27 + $0x34] sm:$0xf] }
  0x38   : > { %v1582_v55 = vld [vmem:[%s2082_s27 + $0xb4] sm:$0xf0]  ;;  %v1388_v57 = vld [vmem:[%s2082_s27 + $0x38] sm:$0xf0]  ;;  %v1581_v58 = vld [vmem:[%s2082_s27 + $0xb4] sm:$0xf]  ;;  %v1387_v60 = vor.u32 %v1566_v53, %v1386_v52 }
  0x39   : > { %v1452_v59 = vld [vmem:[%s2082_s27 + $0xb8] sm:$0xf0]  ;;  %v1451_v61 = vor.u32 %v1582_v55, %v1450_v54  ;;  %v1391_v62 = vor.u32 %v1565_v56, %v1388_v57  ;;  %v1394_v0 = vld [vmem:[%s2082_s27 + $0x40] sm:$0xf]  ;;  %v1568_v1 = vld [vmem:[%s2082_s27 + $0x44] sm:$0xf0] }
  0x3a   : > { %696 = vmatpush.bf16.msra.mxu0 %v1594_v8  ;;  %1707 = vmatpush.bf16.msra.mxu2 %v1594_v8  ;;  %v1455_v63 = vor.u32 %v1581_v58, %v1452_v59  ;;  %v1458_v2 = vld [vmem:[%s2082_s27 + $0xc0] sm:$0xf]  ;;  %v1584_v3 = vld [vmem:[%s2082_s27 + $0xc4] sm:$0xf0]  ;;  %v1567_v4 = vld [vmem:[%s2082_s27 + $0x44] sm:$0xf]  ;;  %v1395_v8 = vor.u32 %v1568_v1, %v1394_v0 }
  0x3b   : > { %785 = vmatpush.bf16.msra.mxu1 %v1602_v9  ;;  %1715 = vmatpush.bf16.msra.mxu3 %v1602_v9  ;;  %v1396_v5 = vld [vmem:[%s2082_s27 + $0x48] sm:$0xf0]  ;;  %v1583_v6 = vld [vmem:[%s2082_s27 + $0xc4] sm:$0xf]  ;;  %v1459_v9 = vor.u32 %v1584_v3, %v1458_v2  ;;  %v1569_v16 = vld [vmem:[%s2082_s27 + $0x54] sm:$0xf] }
  0x3c   : > { %v1460_v7 = vld [vmem:[%s2082_s27 + $0xc8] sm:$0xf0]  ;;  %v1404_v17 = vld [vmem:[%s2082_s27 + $0x58] sm:$0xf0]  ;;  %v1585_v18 = vld [vmem:[%s2082_s27 + $0xd4] sm:$0xf] }
  0x3d   : > { %v1468_v19 = vld [vmem:[%s2082_s27 + $0xd8] sm:$0xf0]  ;;  %v1407_v22 = vor.u32 %v1569_v16, %v1404_v17  ;;  %v1571_v28 = vld [vmem:[%s2082_s27 + $0x64] sm:$0xf]  ;;  %v1412_v29 = vld [vmem:[%s2082_s27 + $0x68] sm:$0xf0] }
  0x3e   : > { %697 = vmatpush.bf16.msra.mxu0 %v1593_v10  ;;  %1708 = vmatpush.bf16.msra.mxu2 %v1593_v10  ;;  %v1399_v10 = vor.u32 %v1567_v4, %v1396_v5  ;;  %v1471_v23 = vor.u32 %v1585_v18, %v1468_v19  ;;  %v1587_v30 = vld [vmem:[%s2082_s27 + $0xe4] sm:$0xf]  ;;  %v1476_v31 = vld [vmem:[%s2082_s27 + $0xe8] sm:$0xf0]  ;;  %v1415_v34 = vor.u32 %v1571_v28, %v1412_v29  ;;  %v1573_v40 = vld [vmem:[%s2082_s27 + $0x74] sm:$0xf] }
  0x3f   : > { %786 = vmatpush.bf16.msra.mxu1 %v1601_v11  ;;  %1716 = vmatpush.bf16.msra.mxu3 %v1601_v11  ;;  %v1463_v11 = vor.u32 %v1583_v6, %v1460_v7  ;;  %v1479_v35 = vor.u32 %v1587_v30, %v1476_v31  ;;  %v1420_v41 = vld [vmem:[%s2082_s27 + $0x78] sm:$0xf0]  ;;  %v1589_v42 = vld [vmem:[%s2082_s27 + $0xf4] sm:$0xf]  ;;  %v2165_v53 = vld [vmem:[%s2290_s3] ss:$0 sm:$0xff] }
  0x40   : > { %v1484_v43 = vld [vmem:[%s2082_s27 + $0xf8] sm:$0xf0]  ;;  %v1423_v46 = vor.u32 %v1573_v40, %v1420_v41 }
  0x41   : > { %v1487_v47 = vor.u32 %v1589_v42, %v1484_v43 }
  0x42   : > { %698 = vmatpush.bf16.msra.mxu0 %v1592_v12  ;;  %1709 = vmatpush.bf16.msra.mxu2 %v1592_v12  ;;  %v1402_v12 = vld [vmem:[%s2082_s27 + $0x50] sm:$0xf] }
  0x43   : > { %787 = vmatpush.bf16.msra.mxu1 %v1600_v13  ;;  %1717 = vmatpush.bf16.msra.mxu3 %v1600_v13  ;;  %v1570_v13 = vld [vmem:[%s2082_s27 + $0x54] sm:$0xf0] }
  0x44   : > { %v1403_v20 = vor.u32 %v1570_v13, %v1402_v12 }
  0x46   : > { %699 = vmatpush.bf16.msra.mxu0 %v1591_v14  ;;  %1710 = vmatpush.bf16.msra.mxu2 %v1591_v14  ;;  %v1466_v14 = vld [vmem:[%s2082_s27 + $0xd0] sm:$0xf] }
  0x47   : > { %788 = vmatpush.bf16.msra.mxu1 %v1599_v15  ;;  %1718 = vmatpush.bf16.msra.mxu3 %v1599_v15  ;;  %v1586_v15 = vld [vmem:[%s2082_s27 + $0xd4] sm:$0xf0] }
  0x48   : > { %v1467_v21 = vor.u32 %v1586_v15, %v1466_v14 }
  0x49   : > { %700 = vmatmul.bf16.vlgmr.msra.gmra.mxu0 %v1363_v24  ;;  %740 = vmatmul.bf16.vlgmr.msra.gmra.mxu2 %v1427_v25  ;;  %v1410_v24 = vld [vmem:[%s2082_s27 + $0x60] sm:$0xf]  ;;  %v1572_v25 = vld [vmem:[%s2082_s27 + $0x64] sm:$0xf0] }
  0x4a   : > { %789 = vmatmul.bf16.vlgmr.msra.gmra.mxu1 %v1367_v26  ;;  %829 = vmatmul.bf16.vlgmr.msra.gmra.mxu3 %v1431_v27  ;;  %v1474_v26 = vld [vmem:[%s2082_s27 + $0xe0] sm:$0xf]  ;;  %v1588_v27 = vld [vmem:[%s2082_s27 + $0xe4] sm:$0xf0]  ;;  %v1411_v32 = vor.u32 %v1572_v25, %v1410_v24 }
  0x4b   : > { %v1475_v33 = vor.u32 %v1588_v27, %v1474_v26 }
  0x59   : > { %705 = vmatmul.bf16.gmra.mxu0 %v1371_v36  ;;  %745 = vmatmul.bf16.gmra.mxu2 %v1435_v37  ;;  %v1418_v36 = vld [vmem:[%s2082_s27 + $0x70] sm:$0xf]  ;;  %v1574_v37 = vld [vmem:[%s2082_s27 + $0x74] sm:$0xf0] }
  0x5a   : > { %794 = vmatmul.bf16.gmra.mxu1 %v1375_v38  ;;  %834 = vmatmul.bf16.gmra.mxu3 %v1439_v39  ;;  %v1482_v38 = vld [vmem:[%s2082_s27 + $0xf0] sm:$0xf]  ;;  %v1590_v39 = vld [vmem:[%s2082_s27 + $0xf4] sm:$0xf0]  ;;  %v1419_v44 = vor.u32 %v1574_v37, %v1418_v36  ;;  %s1880_s27 = scalar_lea.hbm %s2291_s4, 1024 }
  0x5b   : > { %v1483_v45 = vor.u32 %v1590_v39, %v1482_v38  ;;  %p1882_p10 = scmp.lt.s32.totalorder %s1880_s27, %s1876_s8 }
  0x5d   : > { %p1883_p11 = por %p1882_p10, %p1881_p9 }
  0x5f   : > { %p1884_p12 = pnand %p1883_p11, %p1879_p8 }
  0x69   : > { %710 = vmatmul.bf16.gmra.mxu0 %v1379_v48  ;;  %750 = vmatmul.bf16.gmra.mxu2 %v1443_v49 }
  0x6a   : > { %799 = vmatmul.bf16.gmra.mxu1 %v1383_v50  ;;  %839 = vmatmul.bf16.gmra.mxu3 %v1447_v51  ;;  %v2159_v51 = vld [vmem:[%s2289_s2] ss:$0 sm:$0xff] }
  0x79   : > { %715 = vmatmul.bf16.gmra.mxu0 %v1387_v60  ;;  %755 = vmatmul.bf16.gmra.mxu2 %v1451_v61 }
  0x7a   : > { %804 = vmatmul.bf16.gmra.mxu1 %v1391_v62  ;;  %844 = vmatmul.bf16.gmra.mxu3 %v1455_v63 }
  0x89   : > { %720 = vmatmul.bf16.gmra.mxu0 %v1395_v8  ;;  %760 = vmatmul.bf16.gmra.mxu2 %v1459_v9 }
  0x8a   : > { %809 = vmatmul.bf16.gmra.mxu1 %v1399_v10  ;;  %849 = vmatmul.bf16.gmra.mxu3 %v1463_v11 }
  0x99   : > { %725 = vmatmul.bf16.gmra.mxu0 %v1403_v20  ;;  %765 = vmatmul.bf16.gmra.mxu2 %v1467_v21 }
  0x9a   : > { %814 = vmatmul.bf16.gmra.mxu1 %v1407_v22  ;;  %854 = vmatmul.bf16.gmra.mxu3 %v1471_v23 }
  0xa9   : > { %730 = vmatmul.bf16.gmra.mxu0 %v1411_v32  ;;  %770 = vmatmul.bf16.gmra.mxu2 %v1475_v33 }
  0xaa   : > { %819 = vmatmul.bf16.gmra.mxu1 %v1415_v34  ;;  %859 = vmatmul.bf16.gmra.mxu3 %v1479_v35 }
  0xb9   : > { %735 = vmatmul.bf16.gmra.mxu0 %v1419_v44  ;;  %775 = vmatmul.bf16.gmra.mxu2 %v1483_v45 }
  0xba   : > { %824 = vmatmul.bf16.gmra.mxu1 %v1423_v46  ;;  %864 = vmatmul.bf16.gmra.mxu3 %v1487_v47 }
  0xc6   : > { %v701_v48 = vpop.f32.mrf.mxu0 }
  0xc7   : > { %v790_v49 = vpop.f32.mrf.mxu1 }
  0xc8   : > { %v791_v50 = vadd.f32 %v790_v49, %v701_v48 }
  0xca   : > { %v973_v52 = vmul.f32 %v2159_v51, %v791_v50 }
  0xcc   : > { %v741_v54 = vpop.f32.mrf.mxu2  ;;  %v1009_v59 = vadd.f32 %v2165_v53, %v973_v52 }
  0xcd   : > { %v830_v55 = vpop.f32.mrf.mxu3 }
  0xce   : > { %v831_v56 = vadd.f32 %v830_v55, %v741_v54  ;;  %v703_v57 = vpop.f32.mrf.mxu0  ;;  %v1073_v63 = vmul.f32 0.1, %v1009_v59  ;;  %vm1041_vm0 = vcmp.gt.f32.partialorder %v1009_v59, 0.0 }
  0xcf   : > { %v792_v58 = vpop.f32.mrf.mxu1 }
  0xd0   : > { %v793_v60 = vadd.f32 %v792_v58, %v703_v57  ;;  %v989_v61 = vmul.f32 %v2159_v51, %v831_v56  ;;  %v1105_v8 = vsel %vm1041_vm0, %v1009_v59, %v1073_v63 }
  0xd2   : > { %v974_v62 = vmul.f32 %v2159_v51, %v793_v60  ;;  %v1025_v3 = vadd.f32 %v2165_v53, %v989_v61 }
  0xd4   : > { %v1010_v0 = vadd.f32 %v2165_v53, %v974_v62  ;;  %v743_v1 = vpop.f32.mrf.mxu2  ;;  %v1089_v13 = vmul.f32 0.1, %v1025_v3  ;;  %vm1057_vm2 = vcmp.gt.f32.partialorder %v1025_v3, 0.0 }
  0xd5   : > { %v832_v2 = vpop.f32.mrf.mxu3 }
  0xd6   : > { %vm1042_vm1 = vcmp.gt.f32.partialorder %v1010_v0, 0.0  ;;  %v1074_v4 = vmul.f32 0.1, %v1010_v0  ;;  %v833_v5 = vadd.f32 %v832_v2, %v743_v1  ;;  %v706_v6 = vpop.f32.mrf.mxu0  ;;  %v1121_v19 = vsel %vm1057_vm2, %v1025_v3, %v1089_v13 }
  0xd7   : > { %v795_v7 = vpop.f32.mrf.mxu1 }
  0xd8   : > { %v1106_v9 = vsel %vm1042_vm1, %v1010_v0, %v1074_v4  ;;  %v990_v10 = vmul.f32 %v2159_v51, %v833_v5  ;;  %v796_v11 = vadd.f32 %v795_v7, %v706_v6 }
  0xd9   : > { %v1611_v12 = vpack.c.bf16 %v1106_v9, %v1105_v8 }
  0xda   : > { %v1026_v14 = vadd.f32 %v2165_v53, %v990_v10  ;;  %v975_v16 = vmul.f32 %v2159_v51, %v796_v11 }
  0xdb   : > { %1612 = vst [vmem:[%s2175_s11] sm:$0xff] %v1611_v12  }
  0xdc   : > { %vm1058_vm3 = vcmp.gt.f32.partialorder %v1026_v14, 0.0  ;;  %v1090_v15 = vmul.f32 0.1, %v1026_v14  ;;  %v746_v17 = vpop.f32.mrf.mxu2  ;;  %v1011_v25 = vadd.f32 %v2165_v53, %v975_v16 }
  0xdd   : > { %v835_v18 = vpop.f32.mrf.mxu3 }
  0xde   : > { %v1122_v20 = vsel %vm1058_vm3, %v1026_v14, %v1090_v15  ;;  %v836_v21 = vadd.f32 %v835_v18, %v746_v17  ;;  %v708_v22 = vpop.f32.mrf.mxu0  ;;  %v1075_v29 = vmul.f32 0.1, %v1011_v25  ;;  %vm1043_vm4 = vcmp.gt.f32.partialorder %v1011_v25, 0.0 }
  0xdf   : > { %v1651_v23 = vpack.c.bf16 %v1122_v20, %v1121_v19  ;;  %v797_v24 = vpop.f32.mrf.mxu1 }
  0xe0   : > { %v798_v26 = vadd.f32 %v797_v24, %v708_v22  ;;  %v991_v27 = vmul.f32 %v2159_v51, %v836_v21  ;;  %v1107_v38 = vsel %vm1043_vm4, %v1011_v25, %v1075_v29 }
  0xe1   : > { %1695 = vst [vmem:[%s2175_s11 + $0x40] sm:$0xff] %v1651_v23  }
  0xe2   : > { %v976_v28 = vmul.f32 %v2159_v51, %v798_v26  ;;  %v1027_v33 = vadd.f32 %v2165_v53, %v991_v27 }
  0xe4   : > { %v1012_v30 = vadd.f32 %v2165_v53, %v976_v28  ;;  %v748_v31 = vpop.f32.mrf.mxu2  ;;  %v1091_v43 = vmul.f32 0.1, %v1027_v33  ;;  %vm1059_vm6 = vcmp.gt.f32.partialorder %v1027_v33, 0.0 }
  0xe5   : > { %v837_v32 = vpop.f32.mrf.mxu3 }
  0xe6   : > { %vm1044_vm5 = vcmp.gt.f32.partialorder %v1012_v30, 0.0  ;;  %v1076_v34 = vmul.f32 0.1, %v1012_v30  ;;  %v838_v35 = vadd.f32 %v837_v32, %v748_v31  ;;  %v711_v36 = vpop.f32.mrf.mxu0  ;;  %v1123_v49 = vsel %vm1059_vm6, %v1027_v33, %v1091_v43 }
  0xe7   : > { %v800_v37 = vpop.f32.mrf.mxu1 }
  0xe8   : > { %v1108_v39 = vsel %vm1044_vm5, %v1012_v30, %v1076_v34  ;;  %v992_v40 = vmul.f32 %v2159_v51, %v838_v35  ;;  %v801_v41 = vadd.f32 %v800_v37, %v711_v36 }
  0xe9   : > { %v1616_v42 = vpack.c.bf16 %v1108_v39, %v1107_v38 }
  0xea   : > { %v1028_v44 = vadd.f32 %v2165_v53, %v992_v40  ;;  %v977_v46 = vmul.f32 %v2159_v51, %v801_v41 }
  0xeb   : > { %1688 = vst [vmem:[%s2175_s11 + $0x8] sm:$0xff] %v1616_v42  }
  0xec   : > { %vm1060_vm7 = vcmp.gt.f32.partialorder %v1028_v44, 0.0  ;;  %v1092_v45 = vmul.f32 0.1, %v1028_v44  ;;  %v751_v47 = vpop.f32.mrf.mxu2  ;;  %v1013_v57 = vadd.f32 %v2165_v53, %v977_v46 }
  0xed   : > { %v840_v48 = vpop.f32.mrf.mxu3 }
  0xee   : > { %v1124_v50 = vsel %vm1060_vm7, %v1028_v44, %v1092_v45  ;;  %v841_v52 = vadd.f32 %v840_v48, %v751_v47  ;;  %v713_v54 = vpop.f32.mrf.mxu0  ;;  %v1077_v61 = vmul.f32 0.1, %v1013_v57  ;;  %vm1045_vm8 = vcmp.gt.f32.partialorder %v1013_v57, 0.0 }
  0xef   : > { %v1656_v55 = vpack.c.bf16 %v1124_v50, %v1123_v49  ;;  %v802_v56 = vpop.f32.mrf.mxu1 }
  0xf0   : > { %v803_v58 = vadd.f32 %v802_v56, %v713_v54  ;;  %v993_v59 = vmul.f32 %v2159_v51, %v841_v52  ;;  %v1109_v6 = vsel %vm1045_vm8, %v1013_v57, %v1077_v61 }
  0xf1   : > { %1696 = vst [vmem:[%s2175_s11 + $0x48] sm:$0xff] %v1656_v55  }
  0xf2   : > { %v978_v60 = vmul.f32 %v2159_v51, %v803_v58  ;;  %v1029_v1 = vadd.f32 %v2165_v53, %v993_v59 }
  0xf4   : > { %v1014_v62 = vadd.f32 %v2165_v53, %v978_v60  ;;  %v753_v63 = vpop.f32.mrf.mxu2  ;;  %v1093_v11 = vmul.f32 0.1, %v1029_v1  ;;  %vm1061_vm10 = vcmp.gt.f32.partialorder %v1029_v1, 0.0 }
  0xf5   : > { %v842_v0 = vpop.f32.mrf.mxu3 }
  0xf6   : > { %vm1046_vm9 = vcmp.gt.f32.partialorder %v1014_v62, 0.0  ;;  %v1078_v2 = vmul.f32 0.1, %v1014_v62  ;;  %v843_v3 = vadd.f32 %v842_v0, %v753_v63  ;;  %v716_v4 = vpop.f32.mrf.mxu0  ;;  %v1125_v17 = vsel %vm1061_vm10, %v1029_v1, %v1093_v11 }
  0xf7   : > { %v805_v5 = vpop.f32.mrf.mxu1 }
  0xf8   : > { %v1110_v7 = vsel %vm1046_vm9, %v1014_v62, %v1078_v2  ;;  %v994_v8 = vmul.f32 %v2159_v51, %v843_v3  ;;  %v806_v9 = vadd.f32 %v805_v5, %v716_v4 }
  0xf9   : > { %v1621_v10 = vpack.c.bf16 %v1110_v7, %v1109_v6 }
  0xfa   : > { %v1030_v12 = vadd.f32 %v2165_v53, %v994_v8  ;;  %v979_v14 = vmul.f32 %v2159_v51, %v806_v9 }
  0xfb   : > { %1689 = vst [vmem:[%s2175_s11 + $0x10] sm:$0xff] %v1621_v10  }
  0xfc   : > { %vm1062_vm11 = vcmp.gt.f32.partialorder %v1030_v12, 0.0  ;;  %v1094_v13 = vmul.f32 0.1, %v1030_v12  ;;  %v756_v15 = vpop.f32.mrf.mxu2  ;;  %v1015_v23 = vadd.f32 %v2165_v53, %v979_v14 }
  0xfd   : > { %v845_v16 = vpop.f32.mrf.mxu3 }
  0xfe   : > { %v1126_v18 = vsel %vm1062_vm11, %v1030_v12, %v1094_v13  ;;  %v846_v19 = vadd.f32 %v845_v16, %v756_v15  ;;  %v718_v20 = vpop.f32.mrf.mxu0  ;;  %v1079_v27 = vmul.f32 0.1, %v1015_v23  ;;  %vm1047_vm12 = vcmp.gt.f32.partialorder %v1015_v23, 0.0 }
  0xff   : > { %v1661_v21 = vpack.c.bf16 %v1126_v18, %v1125_v17  ;;  %v807_v22 = vpop.f32.mrf.mxu1 }
 0x100   : > { %v808_v24 = vadd.f32 %v807_v22, %v718_v20  ;;  %v995_v25 = vmul.f32 %v2159_v51, %v846_v19  ;;  %v1111_v36 = vsel %vm1047_vm12, %v1015_v23, %v1079_v27 }
 0x101   : > { %1697 = vst [vmem:[%s2175_s11 + $0x50] sm:$0xff] %v1661_v21  }
 0x102   : > { %v980_v26 = vmul.f32 %v2159_v51, %v808_v24  ;;  %v1031_v31 = vadd.f32 %v2165_v53, %v995_v25 }
 0x104   : > { %v1016_v28 = vadd.f32 %v2165_v53, %v980_v26  ;;  %v758_v29 = vpop.f32.mrf.mxu2  ;;  %v1095_v41 = vmul.f32 0.1, %v1031_v31  ;;  %vm1063_vm14 = vcmp.gt.f32.partialorder %v1031_v31, 0.0 }
 0x105   : > { %v847_v30 = vpop.f32.mrf.mxu3 }
 0x106   : > { %vm1048_vm13 = vcmp.gt.f32.partialorder %v1016_v28, 0.0  ;;  %v1080_v32 = vmul.f32 0.1, %v1016_v28  ;;  %v848_v33 = vadd.f32 %v847_v30, %v758_v29  ;;  %v721_v34 = vpop.f32.mrf.mxu0  ;;  %v1127_v47 = vsel %vm1063_vm14, %v1031_v31, %v1095_v41 }
 0x107   : > { %v810_v35 = vpop.f32.mrf.mxu1 }
 0x108   : > { %v1112_v37 = vsel %vm1048_vm13, %v1016_v28, %v1080_v32  ;;  %v996_v38 = vmul.f32 %v2159_v51, %v848_v33  ;;  %v811_v39 = vadd.f32 %v810_v35, %v721_v34 }
 0x109   : > { %v1626_v40 = vpack.c.bf16 %v1112_v37, %v1111_v36 }
 0x10a   : > { %v1032_v42 = vadd.f32 %v2165_v53, %v996_v38  ;;  %v981_v44 = vmul.f32 %v2159_v51, %v811_v39 }
 0x10b   : > { %1690 = vst [vmem:[%s2175_s11 + $0x18] sm:$0xff] %v1626_v40  }
 0x10c   : > { %vm1064_vm15 = vcmp.gt.f32.partialorder %v1032_v42, 0.0  ;;  %v1096_v43 = vmul.f32 0.1, %v1032_v42  ;;  %v761_v45 = vpop.f32.mrf.mxu2  ;;  %v1017_v55 = vadd.f32 %v2165_v53, %v981_v44 }
 0x10d   : > { %v850_v46 = vpop.f32.mrf.mxu3 }
 0x10e   : > { %v1128_v48 = vsel %vm1064_vm15, %v1032_v42, %v1096_v43  ;;  %v851_v49 = vadd.f32 %v850_v46, %v761_v45  ;;  %v723_v50 = vpop.f32.mrf.mxu0  ;;  %v1081_v59 = vmul.f32 0.1, %v1017_v55  ;;  %vm1049_vm0 = vcmp.gt.f32.partialorder %v1017_v55, 0.0 }
 0x10f   : > { %v1666_v52 = vpack.c.bf16 %v1128_v48, %v1127_v47  ;;  %v812_v54 = vpop.f32.mrf.mxu1 }
 0x110   : > { %v813_v56 = vadd.f32 %v812_v54, %v723_v50  ;;  %v997_v57 = vmul.f32 %v2159_v51, %v851_v49  ;;  %v1113_v4 = vsel %vm1049_vm0, %v1017_v55, %v1081_v59 }
 0x111   : > { %1698 = vst [vmem:[%s2175_s11 + $0x58] sm:$0xff] %v1666_v52  }
 0x112   : > { %v982_v58 = vmul.f32 %v2159_v51, %v813_v56  ;;  %v1033_v63 = vadd.f32 %v2165_v53, %v997_v57 }
 0x114   : > { %v1018_v60 = vadd.f32 %v2165_v53, %v982_v58  ;;  %v763_v61 = vpop.f32.mrf.mxu2  ;;  %v1097_v9 = vmul.f32 0.1, %v1033_v63  ;;  %vm1065_vm2 = vcmp.gt.f32.partialorder %v1033_v63, 0.0 }
 0x115   : > { %v852_v62 = vpop.f32.mrf.mxu3 }
 0x116   : > { %vm1050_vm1 = vcmp.gt.f32.partialorder %v1018_v60, 0.0  ;;  %v1082_v0 = vmul.f32 0.1, %v1018_v60  ;;  %v853_v1 = vadd.f32 %v852_v62, %v763_v61  ;;  %v726_v2 = vpop.f32.mrf.mxu0  ;;  %v1129_v15 = vsel %vm1065_vm2, %v1033_v63, %v1097_v9 }
 0x117   : > { %v815_v3 = vpop.f32.mrf.mxu1 }
 0x118   : > { %v1114_v5 = vsel %vm1050_vm1, %v1018_v60, %v1082_v0  ;;  %v998_v6 = vmul.f32 %v2159_v51, %v853_v1  ;;  %v816_v7 = vadd.f32 %v815_v3, %v726_v2 }
 0x119   : > { %v1631_v8 = vpack.c.bf16 %v1114_v5, %v1113_v4 }
 0x11a   : > { %v1034_v10 = vadd.f32 %v2165_v53, %v998_v6  ;;  %v983_v12 = vmul.f32 %v2159_v51, %v816_v7 }
 0x11b   : > { %1691 = vst [vmem:[%s2175_s11 + $0x20] sm:$0xff] %v1631_v8  }
 0x11c   : > { %vm1066_vm3 = vcmp.gt.f32.partialorder %v1034_v10, 0.0  ;;  %v1098_v11 = vmul.f32 0.1, %v1034_v10  ;;  %v766_v13 = vpop.f32.mrf.mxu2  ;;  %v1019_v21 = vadd.f32 %v2165_v53, %v983_v12 }
 0x11d   : > { %v855_v14 = vpop.f32.mrf.mxu3 }
 0x11e   : > { %v1130_v16 = vsel %vm1066_vm3, %v1034_v10, %v1098_v11  ;;  %v856_v17 = vadd.f32 %v855_v14, %v766_v13  ;;  %v728_v18 = vpop.f32.mrf.mxu0  ;;  %v1083_v25 = vmul.f32 0.1, %v1019_v21  ;;  %vm1051_vm4 = vcmp.gt.f32.partialorder %v1019_v21, 0.0 }
 0x11f   : > { %v1671_v19 = vpack.c.bf16 %v1130_v16, %v1129_v15  ;;  %v817_v20 = vpop.f32.mrf.mxu1 }
 0x120   : > { %v818_v22 = vadd.f32 %v817_v20, %v728_v18  ;;  %v999_v23 = vmul.f32 %v2159_v51, %v856_v17  ;;  %v1115_v34 = vsel %vm1051_vm4, %v1019_v21, %v1083_v25 }
 0x121   : > { %1699 = vst [vmem:[%s2175_s11 + $0x60] sm:$0xff] %v1671_v19  }
 0x122   : > { %v984_v24 = vmul.f32 %v2159_v51, %v818_v22  ;;  %v1035_v29 = vadd.f32 %v2165_v53, %v999_v23 }
 0x124   : > { %v1020_v26 = vadd.f32 %v2165_v53, %v984_v24  ;;  %v768_v27 = vpop.f32.mrf.mxu2  ;;  %v1099_v39 = vmul.f32 0.1, %v1035_v29  ;;  %vm1067_vm6 = vcmp.gt.f32.partialorder %v1035_v29, 0.0 }
 0x125   : > { %v857_v28 = vpop.f32.mrf.mxu3 }
 0x126   : > { %vm1052_vm5 = vcmp.gt.f32.partialorder %v1020_v26, 0.0  ;;  %v1084_v30 = vmul.f32 0.1, %v1020_v26  ;;  %v858_v31 = vadd.f32 %v857_v28, %v768_v27  ;;  %v731_v32 = vpop.f32.mrf.mxu0  ;;  %v1131_v45 = vsel %vm1067_vm6, %v1035_v29, %v1099_v39 }
 0x127   : > { %v820_v33 = vpop.f32.mrf.mxu1 }
 0x128   : > { %v1116_v35 = vsel %vm1052_vm5, %v1020_v26, %v1084_v30  ;;  %v1000_v36 = vmul.f32 %v2159_v51, %v858_v31  ;;  %v821_v37 = vadd.f32 %v820_v33, %v731_v32 }
 0x129   : > { %v1636_v38 = vpack.c.bf16 %v1116_v35, %v1115_v34 }
 0x12a   : > { %v1036_v40 = vadd.f32 %v2165_v53, %v1000_v36  ;;  %v985_v42 = vmul.f32 %v2159_v51, %v821_v37 }
 0x12b   : > { %1692 = vst [vmem:[%s2175_s11 + $0x28] sm:$0xff] %v1636_v38  }
 0x12c   : > { %vm1068_vm7 = vcmp.gt.f32.partialorder %v1036_v40, 0.0  ;;  %v1100_v41 = vmul.f32 0.1, %v1036_v40  ;;  %v771_v43 = vpop.f32.mrf.mxu2  ;;  %v1021_v52 = vadd.f32 %v2165_v53, %v985_v42 }
 0x12d   : > { %v860_v44 = vpop.f32.mrf.mxu3 }
 0x12e   : > { %v1132_v46 = vsel %vm1068_vm7, %v1036_v40, %v1100_v41  ;;  %v861_v47 = vadd.f32 %v860_v44, %v771_v43  ;;  %v733_v48 = vpop.f32.mrf.mxu0  ;;  %v1085_v57 = vmul.f32 0.1, %v1021_v52  ;;  %vm1053_vm8 = vcmp.gt.f32.partialorder %v1021_v52, 0.0 }
 0x12f   : > { %v1676_v49 = vpack.c.bf16 %v1132_v46, %v1131_v45  ;;  %v822_v50 = vpop.f32.mrf.mxu1 }
 0x130   : > { %v823_v54 = vadd.f32 %v822_v50, %v733_v48  ;;  %v1001_v55 = vmul.f32 %v2159_v51, %v861_v47  ;;  %v1117_v2 = vsel %vm1053_vm8, %v1021_v52, %v1085_v57 }
 0x131   : > { %1700 = vst [vmem:[%s2175_s11 + $0x68] sm:$0xff] %v1676_v49  }
 0x132   : > { %v986_v56 = vmul.f32 %v2159_v51, %v823_v54  ;;  %v1037_v61 = vadd.f32 %v2165_v53, %v1001_v55 }
 0x134   : > { %v1022_v58 = vadd.f32 %v2165_v53, %v986_v56  ;;  %v773_v59 = vpop.f32.mrf.mxu2  ;;  %v1101_v7 = vmul.f32 0.1, %v1037_v61  ;;  %vm1069_vm10 = vcmp.gt.f32.partialorder %v1037_v61, 0.0 }
 0x135   : > { %v862_v60 = vpop.f32.mrf.mxu3 }
 0x136   : > { %vm1054_vm9 = vcmp.gt.f32.partialorder %v1022_v58, 0.0  ;;  %v1086_v62 = vmul.f32 0.1, %v1022_v58  ;;  %v863_v63 = vadd.f32 %v862_v60, %v773_v59  ;;  %v736_v0 = vpop.f32.mrf.mxu0  ;;  %v1133_v13 = vsel %vm1069_vm10, %v1037_v61, %v1101_v7 }
 0x137   : > { %v825_v1 = vpop.f32.mrf.mxu1 }
 0x138   : > { %v1118_v3 = vsel %vm1054_vm9, %v1022_v58, %v1086_v62  ;;  %v1002_v4 = vmul.f32 %v2159_v51, %v863_v63  ;;  %v826_v5 = vadd.f32 %v825_v1, %v736_v0 }
 0x139   : > { %v1641_v6 = vpack.c.bf16 %v1118_v3, %v1117_v2 }
 0x13a   : > { %v1038_v8 = vadd.f32 %v2165_v53, %v1002_v4  ;;  %v987_v10 = vmul.f32 %v2159_v51, %v826_v5 }
 0x13b   : > { %1693 = vst [vmem:[%s2175_s11 + $0x30] sm:$0xff] %v1641_v6  }
 0x13c   : > { %vm1070_vm11 = vcmp.gt.f32.partialorder %v1038_v8, 0.0  ;;  %v1102_v9 = vmul.f32 0.1, %v1038_v8  ;;  %v776_v11 = vpop.f32.mrf.mxu2  ;;  %v1023_v19 = vadd.f32 %v2165_v53, %v987_v10 }
 0x13d   : > { %v865_v12 = vpop.f32.mrf.mxu3 }
 0x13e   : > { %v1134_v14 = vsel %vm1070_vm11, %v1038_v8, %v1102_v9  ;;  %v866_v15 = vadd.f32 %v865_v12, %v776_v11  ;;  %v738_v16 = vpop.f32.mrf.mxu0  ;;  %v1087_v23 = vmul.f32 0.1, %v1023_v19  ;;  %vm1055_vm12 = vcmp.gt.f32.partialorder %v1023_v19, 0.0 }
 0x13f   : > { %v1681_v17 = vpack.c.bf16 %v1134_v14, %v1133_v13  ;;  %v827_v18 = vpop.f32.mrf.mxu1 }
 0x140   : > { %v828_v20 = vadd.f32 %v827_v18, %v738_v16  ;;  %v1003_v21 = vmul.f32 %v2159_v51, %v866_v15  ;;  %v1119_v30 = vsel %vm1055_vm12, %v1023_v19, %v1087_v23 }
 0x141   : > { %1701 = vst [vmem:[%s2175_s11 + $0x70] sm:$0xff] %v1681_v17  }
 0x142   : > { %v988_v22 = vmul.f32 %v2159_v51, %v828_v20  ;;  %v1039_v27 = vadd.f32 %v2165_v53, %v1003_v21 }
 0x144   : > { %v1024_v24 = vadd.f32 %v2165_v53, %v988_v22  ;;  %v778_v25 = vpop.f32.mrf.mxu2  ;;  %v1103_v34 = vmul.f32 0.1, %v1039_v27  ;;  %vm1071_vm14 = vcmp.gt.f32.partialorder %v1039_v27, 0.0 }
 0x145   : > { %v867_v26 = vpop.f32.mrf.mxu3 }
 0x146   : > { %vm1056_vm13 = vcmp.gt.f32.partialorder %v1024_v24, 0.0  ;;  %v1088_v28 = vmul.f32 0.1, %v1024_v24  ;;  %v868_v29 = vadd.f32 %v867_v26, %v778_v25  ;;  %v1135_v37 = vsel %vm1071_vm14, %v1039_v27, %v1103_v34 }
 0x148   : > { %v1120_v31 = vsel %vm1056_vm13, %v1024_v24, %v1088_v28  ;;  %v1004_v32 = vmul.f32 %v2159_v51, %v868_v29 }
 0x149   : > { %v1646_v33 = vpack.c.bf16 %v1120_v31, %v1119_v30 }
 0x14a   : > { %v1040_v35 = vadd.f32 %v2165_v53, %v1004_v32 }
 0x14b   : > { %1694 = vst [vmem:[%s2175_s11 + $0x38] sm:$0xff] %v1646_v33  }
 0x14c   : > { %vm1072_vm15 = vcmp.gt.f32.partialorder %v1040_v35, 0.0  ;;  %v1104_v36 = vmul.f32 0.1, %v1040_v35 }
 0x14e   : > { %v1136_v38 = vsel %vm1072_vm15, %v1040_v35, %v1104_v36 }
 0x14f   : > { %v1686_v51 = vpack.c.bf16 %v1136_v38, %v1135_v37 }
 0x151   : > { %1702 = vst [vmem:[%s2175_s11 + $0x78] sm:$0xff] %v1686_v51  }
 0x152   : > { %1887 = shalt.err (!%p1884_p12)
}
 0x153   : > { %s1953_s10 = smov 64   ;;  %s1954_s25 = smov 4  }
 0x154   : > { %1725 = dma.vmem_to_hbm [thread:$0]  (%p2058_p3), %s1216_s18, 2048, %s1218_s6, %s1202_s7, %s1953_s10, %s1953_s10, %s1954_s25  }
 0x155 PF: > { %p1742_p13 = scmp.ge.s32.totalorder %s1946_s20, 2  ;;  %s1232_s30 = sand.u32 1, %s1926_s15  }
 0x156   : > { %s1233_s9 = scalar_lea.sflag [#allocation5], %s1232_s30 }
 0x157   : > { %p1736_p0 = pnand %p1742_p13, %p2029_p6 }
 0x159   : > { %p1737_p5 = pneg %p1736_p0 }
 0x15b   : > { %1921 = dma.done.wait (%p1737_p5), %s1233_s9, 2048  }
 0x15c   : > { %1923 = vsyncadd (%p1737_p5), %s1233_s9, 4294965248  ;;  %s21_s20 = sadd.s32 1, %s1946_s20   ;;  %s2303_s12 = sld [smem:[#allocation12_spill]] }
 0x15d   : > { %p18_p7 = scmp.ge.s32.totalorder %s21_s20, 10   ;;  %s2304_s15 = smov %s1930_s16 }
 0x15e   : > { %s2305_s16 = smov %s1934_s17  ;;  %s2306_s17 = smov %s2067_s22 }
 0x15f   : > { %s2307_s18 = smov %s1942_s19  ;;  %20 = sbr.rel (!%p18_p7) target bundleno = 9 (0x9), region = 100 }
 0x162   : > { %s2308_s19 = smov %s2303_s12 }
 0x164   :  { %1239 = vsyncpa [#allocation4], 1 }
 0x165   :  { %1241 = vsyncpa [#allocation4 + $0x1], 1 }
 0x166   :  { %1242 = vsyncpa [#allocation7], 1 }
 0x167   :  { %1243 = vsyncpa [#allocation5], 1 }
 0x168   :  { %1245 = vsyncpa [#allocation5 + $0x1], 1 }

</bundles_post_ra>
